<compile_context>
chip_gen: v6e
topology: v6e:2x2x1
jax: 0.10.0
libtpu: 0.0.40
codegen_flags: <defaults>
</compile_context>

<pallas_src>
import functools

import jax
import jax.numpy as jnp
from jax.experimental import pallas as pl
from jax.experimental.pallas import tpu as pltpu


# ---------------------------------------------------------------------------
# Kernel
# ---------------------------------------------------------------------------
def _actor_kernel(
    obs_ref,
    w1_ref, b1_ref, lnw_ref, lnb_ref,       # trunk (Linear + LayerNorm)
    w2_ref, b2_ref, w3_ref, b3_ref,         # policy hidden layers
    wh_ref, bh_ref,                         # fused head: [mu | log_std | pad]
    out_ref,                                # fused output: [mu | std | pad]
    *, feature_dim, action_dim, log_std_min, log_std_max,
):
    f32 = jnp.float32
    bf16 = jnp.bfloat16

    # ---- trunk: Linear -> (masked) LayerNorm -> Tanh ----
    obs = obs_ref[...]
    h = jnp.dot(obs.astype(bf16), w1_ref[...], preferred_element_type=f32)
    h = h + b1_ref[...]

    f_pad = h.shape[-1]
    col = jax.lax.broadcasted_iota(jnp.int32, (1, f_pad), 1)
    fmask = (col < feature_dim).astype(f32)        # 1 on real features, 0 on pad
    inv_n = 1.0 / float(feature_dim)

    mean = jnp.sum(h * fmask, axis=-1, keepdims=True) * inv_n
    centered = (h - mean) * fmask
    var = jnp.sum(centered * centered, axis=-1, keepdims=True) * inv_n
    inv = jax.lax.rsqrt(var + 1e-5)
    # ln_w / ln_b are zero-padded, so padded columns stay exactly 0.
    h = centered * inv * lnw_ref[...] + lnb_ref[...]
    h = jnp.tanh(h)

    # ---- policy MLP (bf16 MXU inputs, f32 accumulation) ----
    x = jnp.dot(h.astype(bf16), w2_ref[...], preferred_element_type=f32) + b2_ref[...]
    x = jnp.maximum(x, 0.0)
    x = jnp.dot(x.astype(bf16), w3_ref[...], preferred_element_type=f32) + b3_ref[...]
    x = jnp.maximum(x, 0.0)

    # ---- fused head: one lane-dense matmul, columns = [mu | log_std | pad] ----
    y = jnp.dot(x.astype(bf16), wh_ref[...], preferred_element_type=f32) + bh_ref[...]

    hcol = jax.lax.broadcasted_iota(jnp.int32, (1, y.shape[-1]), 1)
    is_log_std = jnp.logical_and(hcol >= action_dim, hcol < 2 * action_dim)

    log_std = jnp.tanh(y)
    log_std = log_std_min + 0.5 * (log_std_max - log_std_min) * (log_std + 1.0)
    std = jnp.exp(log_std)

    # One lane-dense store: mu columns pass through, log_std columns become std.
    out_ref[...] = jnp.where(is_log_std, std, y).astype(out_ref.dtype)


# ---------------------------------------------------------------------------
# Wrapper
# ---------------------------------------------------------------------------
def _round_up(n, m):
    return ((n + m - 1) // m) * m


def _pad_to(x, axis, target):
    pad = target - x.shape[axis]
    if pad == 0:
        return x
    widths = [(0, 0)] * x.ndim
    widths[axis] = (0, pad)
    return jnp.pad(x, widths)


def actor_forward(obs, params, log_std_bounds, *, block_b=128):
    """obs: [B, repr_dim] float32. Returns (mu, std), each [B, action_dim]."""
    B, repr_dim = obs.shape
    feature_dim = params["w1"].shape[1]
    hidden_dim = params["w2"].shape[1]
    action_dim = params["wh"].shape[1] // 2
    log_std_min, log_std_max = log_std_bounds

    LANE = 128
    R = _round_up(repr_dim, LANE)
    F = _round_up(feature_dim, LANE)
    H = _round_up(hidden_dim, LANE)
    A2 = _round_up(2 * action_dim, LANE)

    bf16 = jnp.bfloat16
    # Zero-pad to lane multiples; weights to bf16 (MXU inputs), biases/LN in f32.
    obs_p = _pad_to(obs, 1, R)
    w1 = _pad_to(_pad_to(params["w1"], 0, R), 1, F).astype(bf16)
    b1 = _pad_to(params["b1"], 1, F)
    lnw = _pad_to(params["ln_w"], 1, F)
    lnb = _pad_to(params["ln_b"], 1, F)
    w2 = _pad_to(_pad_to(params["w2"], 0, F), 1, H).astype(bf16)
    b2 = _pad_to(params["b2"], 1, H)
    w3 = _pad_to(_pad_to(params["w3"], 0, H), 1, H).astype(bf16)
    b3 = _pad_to(params["b3"], 1, H)
    wh = _pad_to(_pad_to(params["wh"], 0, H), 1, A2).astype(bf16)
    bh = _pad_to(params["bh"], 1, A2)

    args = (obs_p, w1, b1, lnw, lnb, w2, b2, w3, b3, wh, bh)

    kernel = functools.partial(
        _actor_kernel,
        feature_dim=feature_dim,
        action_dim=action_dim,
        log_std_min=float(log_std_min),
        log_std_max=float(log_std_max),
    )

    total_bytes = sum(int(a.size) * a.dtype.itemsize for a in args)
    total_bytes += _round_up(B, block_b) * A2 * 4
    vmem_limit = int(min(64 << 20, max(16 << 20, 2 * total_bytes + (2 << 20))))

    # TODO(synk): at production DrQ-v2 scale (repr_dim in the tens of
    # thousands), additionally K-tile the first matmul (grid axis over R with a
    # f32 accumulator) and single-buffer the weight BlockSpecs so the kernel
    # fits v7x's 64 MiB VMEM.

    if B >= 2 * block_b:
        # ---- batch-tiled path: real grid, batch axis "parallel" (megacore),
        #      weights resident via constant index_maps. ----
        Bp = _round_up(B, block_b)
        obs_p = _pad_to(obs_p, 0, Bp)
        const = lambda shape: pl.BlockSpec(shape, lambda i: (0, 0))
        in_specs = [
            pl.BlockSpec((block_b, R), lambda i: (i, 0)),     # obs
            const((R, F)), const((1, F)),                     # w1, b1
            const((1, F)), const((1, F)),                     # ln_w, ln_b
            const((F, H)), const((1, H)),                     # w2, b2
            const((H, H)), const((1, H)),                     # w3, b3
            const((H, A2)), const((1, A2)),                   # wh, bh
        ]
        out_specs = pl.BlockSpec((block_b, A2), lambda i: (i, 0))
        out = pl.pallas_call(
            kernel,
            grid=(Bp // block_b,),
            in_specs=in_specs,
            out_specs=out_specs,
            out_shape=jax.ShapeDtypeStruct((Bp, A2), jnp.float32),
            compiler_params=pltpu.CompilerParams(
                dimension_semantics=("parallel",),
                vmem_limit_bytes=vmem_limit,
            ),
        )(*args)
    else:
        # ---- small-batch path: no grid, every operand is a full VMEM block
        #      (single DMA per operand, no pipeline prologue/epilogue). ----
        vmem_spec = pl.BlockSpec(memory_space=pltpu.MemorySpace.VMEM)
        out = pl.pallas_call(
            kernel,
            in_specs=[vmem_spec] * len(args),
            out_specs=vmem_spec,
            out_shape=jax.ShapeDtypeStruct((B, A2), jnp.float32),
            compiler_params=pltpu.CompilerParams(vmem_limit_bytes=vmem_limit),
        )(*args)

    mu = out[:B, :action_dim]
    std = out[:B, action_dim:2 * action_dim]
    return mu, std


# ---------------------------------------------------------------------------
# Params / reference
# ---------------------------------------------------------------------------
def init_params(key, repr_dim, feature_dim, hidden_dim, action_dim):
    """Deterministic synthetic init (stand-in for utils.weight_init)."""
    ks = jax.random.split(key, 8)

    def lin(kw, kb, fan_in, fan_out):
        w = jax.random.normal(kw, (fan_in, fan_out), jnp.float32) / jnp.sqrt(fan_in)
        b = 0.1 * jax.random.normal(kb, (1, fan_out), jnp.float32)
        return w, b

    w1, b1 = lin(ks[0], ks[1], repr_dim, feature_dim)
    w2, b2 = lin(ks[2], ks[3], feature_dim, hidden_dim)
    w3, b3 = lin(ks[4], ks[5], hidden_dim, hidden_dim)
    wh, bh = lin(ks[6], ks[7], hidden_dim, 2 * action_dim)   # fused mu/log_std head
    return {
        "w1": w1, "b1": b1,
        "ln_w": jnp.ones((1, feature_dim), jnp.float32),
        "ln_b": jnp.zeros((1, feature_dim), jnp.float32),
        "w2": w2, "b2": b2,
        "w3": w3, "b3": b3,
        "wh": wh, "bh": bh,
    }


def actor_reference(obs, params, log_std_bounds):
    """Pure-JAX reference mirroring the kernel's precision policy
    (bf16 matmul inputs, f32 accumulation, f32 elementwise)."""
    bf16, f32 = jnp.bfloat16, jnp.float32

    def mm(x, w):
        return jnp.dot(x.astype(bf16), w.astype(bf16), preferred_element_type=f32)

    h = mm(obs, params["w1"]) + params["b1"]
    mean = jnp.mean(h, axis=-1, keepdims=True)
    var = jnp.mean((h - mean) ** 2, axis=-1, keepdims=True)
    h = (h - mean) * jax.lax.rsqrt(var + 1e-5) * params["ln_w"] + params["ln_b"]
    h = jnp.tanh(h)
    x = jax.nn.relu(mm(h, params["w2"]) + params["b2"])
    x = jax.nn.relu(mm(x, params["w3"]) + params["b3"])
    y = mm(x, params["wh"]) + params["bh"]
    A = params["wh"].shape[1] // 2
    mu, log_std = y[:, :A], y[:, A:]
    log_std = jnp.tanh(log_std)
    lo, hi = log_std_bounds
    log_std = lo + 0.5 * (hi - lo) * (log_std + 1.0)
    return mu, jnp.exp(log_std)


# ---------------------------------------------------------------------------
# Self-test
# ---------------------------------------------------------------------------
if __name__ == "__main__":
    # Small, non-128-aligned shapes (exercises the padding/masked-LN paths);
    # consistent with the module's forward (DrQ-v2-style dims, scaled down).
    repr_dim, feature_dim, hidden_dim, action_dim = 64, 50, 128, 6
    log_std_bounds = (-10.0, 2.0)

    key = jax.random.PRNGKey(0)
    k_obs_s, k_obs_b, k_params = jax.random.split(key, 3)
    params = init_params(k_params, repr_dim, feature_dim, hidden_dim, action_dim)

    # 1) Small batch -> no-grid (single-shot VMEM) path.
    obs_small = jax.random.normal(k_obs_s, (8, repr_dim), jnp.float32)
    mu, std = actor_forward(obs_small, params, log_std_bounds)
    jax.block_until_ready((mu, std))
    mu_r, std_r = actor_reference(obs_small, params, log_std_bounds)
    assert mu.shape == (8, action_dim) and std.shape == (8, action_dim)
    assert jnp.allclose(mu, mu_r, atol=1e-3, rtol=1e-3), "mu mismatch (small batch)"
    assert jnp.allclose(std, std_r, atol=1e-3, rtol=1e-3), "std mismatch (small batch)"

    # 2) Larger batch -> batch-tiled "parallel" grid path (weights resident).
    obs_big = jax.random.normal(k_obs_b, (256, repr_dim), jnp.float32)
    mu2, std2 = actor_forward(obs_big, params, log_std_bounds)
    jax.block_until_ready((mu2, std2))
    mu2_r, std2_r = actor_reference(obs_big, params, log_std_bounds)
    assert jnp.allclose(mu2, mu2_r, atol=1e-3, rtol=1e-3), "mu mismatch (big batch)"
    assert jnp.allclose(std2, std2_r, atol=1e-3, rtol=1e-3), "std mismatch (big batch)"

    # TODO(synk): SquashedNormal sampling / log_prob (tanh-transformed Normal)
    # is a distribution-level op, not part of the kernel; we return (mu, std).
    print("KERNEL_OK")
</pallas_src>

<mosaic_0001>
module attributes {stable_mosaic.version = 11 : i64} {
  func.func @_actor_kernel(%arg0: memref<8x128xf32, #tpu.memory_space<vmem>>, %arg1: memref<128x128xbf16, #tpu.memory_space<vmem>>, %arg2: memref<1x128xf32, #tpu.memory_space<vmem>>, %arg3: memref<1x128xf32, #tpu.memory_space<vmem>>, %arg4: memref<1x128xf32, #tpu.memory_space<vmem>>, %arg5: memref<128x128xbf16, #tpu.memory_space<vmem>>, %arg6: memref<1x128xf32, #tpu.memory_space<vmem>>, %arg7: memref<128x128xbf16, #tpu.memory_space<vmem>>, %arg8: memref<1x128xf32, #tpu.memory_space<vmem>>, %arg9: memref<128x128xbf16, #tpu.memory_space<vmem>>, %arg10: memref<1x128xf32, #tpu.memory_space<vmem>>, %arg11: memref<8x128xf32, #tpu.memory_space<vmem>>) attributes {dimension_semantics = [], scalar_prefetch = 0 : i64, scratch_operands = 0 : i64, tpu.core_type = #tpu.core_type<tc>} {
    %c0 = arith.constant 0 : index
    %c0_0 = arith.constant 0 : index
    %0 = vector.load %arg0[%c0, %c0_0] : memref<8x128xf32, #tpu.memory_space<vmem>>, vector<8x128xf32>
    %1 = arith.truncf %0 : vector<8x128xf32> to vector<8x128xbf16>
    %c0_1 = arith.constant 0 : index
    %c0_2 = arith.constant 0 : index
    %2 = vector.load %arg1[%c0_1, %c0_2] : memref<128x128xbf16, #tpu.memory_space<vmem>>, vector<128x128xbf16>
    %cst = arith.constant dense<0.000000e+00> : vector<8x128xf32>
    %3 = tpu.matmul %1, %2, %cst {dimension_numbers = #tpu.dot_dimension_numbers<[1], [0], [0], [1], [0, 0, 1, 1], [], []>} : vector<8x128xbf16>, vector<128x128xbf16>, vector<8x128xf32> -> vector<8x128xf32>
    %c0_3 = arith.constant 0 : index
    %c0_4 = arith.constant 0 : index
    %4 = vector.load %arg2[%c0_3, %c0_4] : memref<1x128xf32, #tpu.memory_space<vmem>>, vector<1x128xf32>
    %5 = vector.broadcast %4 : vector<1x128xf32> to vector<8x128xf32>
    %6 = arith.addf %3, %5 : vector<8x128xf32>
    %7 = tpu.iota {dimensions = array<i32: 1>} : vector<1x128xi32>
    %c50_i32 = arith.constant 50 : i32
    %8 = vector.broadcast %c50_i32 : i32 to vector<1x128xi32>
    %9 = arith.cmpi slt, %7, %8 : vector<1x128xi32>
    %10 = arith.extui %9 : vector<1x128xi1> to vector<1x128xi32>
    %11 = arith.sitofp %10 : vector<1x128xi32> to vector<1x128xf32>
    %12 = vector.broadcast %11 : vector<1x128xf32> to vector<8x128xf32>
    %13 = arith.mulf %6, %12 : vector<8x128xf32>
    %cst_5 = arith.constant dense<0.000000e+00> : vector<8xf32>
    %14 = vector.multi_reduction <add>, %13, %cst_5 [1] : vector<8x128xf32> to vector<8xf32>
    %15 = vector.shape_cast %14 : vector<8xf32> to vector<8x1xf32>
    %cst_6 = arith.constant 2.000000e-02 : f32
    %16 = vector.broadcast %cst_6 : f32 to vector<8x1xf32>
    %17 = arith.mulf %15, %16 : vector<8x1xf32>
    %18 = vector.broadcast %17 : vector<8x1xf32> to vector<8x128xf32>
    %19 = arith.subf %6, %18 : vector<8x128xf32>
    %20 = vector.broadcast %11 : vector<1x128xf32> to vector<8x128xf32>
    %21 = arith.mulf %19, %20 : vector<8x128xf32>
    %22 = arith.mulf %21, %21 : vector<8x128xf32>
    %cst_7 = arith.constant dense<0.000000e+00> : vector<8xf32>
    %23 = vector.multi_reduction <add>, %22, %cst_7 [1] : vector<8x128xf32> to vector<8xf32>
    %24 = vector.shape_cast %23 : vector<8xf32> to vector<8x1xf32>
    %cst_8 = arith.constant 2.000000e-02 : f32
    %25 = vector.broadcast %cst_8 : f32 to vector<8x1xf32>
    %26 = arith.mulf %24, %25 : vector<8x1xf32>
    %cst_9 = arith.constant 9.99999974E-6 : f32
    %27 = vector.broadcast %cst_9 : f32 to vector<8x1xf32>
    %28 = arith.addf %26, %27 : vector<8x1xf32>
    %29 = math.rsqrt %28 : vector<8x1xf32>
    %30 = vector.broadcast %29 : vector<8x1xf32> to vector<8x128xf32>
    %31 = arith.mulf %21, %30 : vector<8x128xf32>
    %c0_10 = arith.constant 0 : index
    %c0_11 = arith.constant 0 : index
    %32 = vector.load %arg3[%c0_10, %c0_11] : memref<1x128xf32, #tpu.memory_space<vmem>>, vector<1x128xf32>
    %33 = vector.broadcast %32 : vector<1x128xf32> to vector<8x128xf32>
    %34 = arith.mulf %31, %33 : vector<8x128xf32>
    %c0_12 = arith.constant 0 : index
    %c0_13 = arith.constant 0 : index
    %35 = vector.load %arg4[%c0_12, %c0_13] : memref<1x128xf32, #tpu.memory_space<vmem>>, vector<1x128xf32>
    %36 = vector.broadcast %35 : vector<1x128xf32> to vector<8x128xf32>
    %37 = arith.addf %34, %36 : vector<8x128xf32>
    %38 = math.tanh %37 : vector<8x128xf32>
    %39 = arith.truncf %38 : vector<8x128xf32> to vector<8x128xbf16>
    %c0_14 = arith.constant 0 : index
    %c0_15 = arith.constant 0 : index
    %40 = vector.load %arg5[%c0_14, %c0_15] : memref<128x128xbf16, #tpu.memory_space<vmem>>, vector<128x128xbf16>
    %cst_16 = arith.constant dense<0.000000e+00> : vector<8x128xf32>
    %41 = tpu.matmul %39, %40, %cst_16 {dimension_numbers = #tpu.dot_dimension_numbers<[1], [0], [0], [1], [0, 0, 1, 1], [], []>} : vector<8x128xbf16>, vector<128x128xbf16>, vector<8x128xf32> -> vector<8x128xf32>
    %c0_17 = arith.constant 0 : index
    %c0_18 = arith.constant 0 : index
    %42 = vector.load %arg6[%c0_17, %c0_18] : memref<1x128xf32, #tpu.memory_space<vmem>>, vector<1x128xf32>
    %43 = vector.broadcast %42 : vector<1x128xf32> to vector<8x128xf32>
    %44 = arith.addf %41, %43 : vector<8x128xf32>
    %cst_19 = arith.constant 0.000000e+00 : f32
    %45 = vector.broadcast %cst_19 : f32 to vector<8x128xf32>
    %46 = arith.maximumf %44, %45 : vector<8x128xf32>
    %47 = arith.truncf %46 : vector<8x128xf32> to vector<8x128xbf16>
    %c0_20 = arith.constant 0 : index
    %c0_21 = arith.constant 0 : index
    %48 = vector.load %arg7[%c0_20, %c0_21] : memref<128x128xbf16, #tpu.memory_space<vmem>>, vector<128x128xbf16>
    %cst_22 = arith.constant dense<0.000000e+00> : vector<8x128xf32>
    %49 = tpu.matmul %47, %48, %cst_22 {dimension_numbers = #tpu.dot_dimension_numbers<[1], [0], [0], [1], [0, 0, 1, 1], [], []>} : vector<8x128xbf16>, vector<128x128xbf16>, vector<8x128xf32> -> vector<8x128xf32>
    %c0_23 = arith.constant 0 : index
    %c0_24 = arith.constant 0 : index
    %50 = vector.load %arg8[%c0_23, %c0_24] : memref<1x128xf32, #tpu.memory_space<vmem>>, vector<1x128xf32>
    %51 = vector.broadcast %50 : vector<1x128xf32> to vector<8x128xf32>
    %52 = arith.addf %49, %51 : vector<8x128xf32>
    %cst_25 = arith.constant 0.000000e+00 : f32
    %53 = vector.broadcast %cst_25 : f32 to vector<8x128xf32>
    %54 = arith.maximumf %52, %53 : vector<8x128xf32>
    %55 = arith.truncf %54 : vector<8x128xf32> to vector<8x128xbf16>
    %c0_26 = arith.constant 0 : index
    %c0_27 = arith.constant 0 : index
    %56 = vector.load %arg9[%c0_26, %c0_27] : memref<128x128xbf16, #tpu.memory_space<vmem>>, vector<128x128xbf16>
    %cst_28 = arith.constant dense<0.000000e+00> : vector<8x128xf32>
    %57 = tpu.matmul %55, %56, %cst_28 {dimension_numbers = #tpu.dot_dimension_numbers<[1], [0], [0], [1], [0, 0, 1, 1], [], []>} : vector<8x128xbf16>, vector<128x128xbf16>, vector<8x128xf32> -> vector<8x128xf32>
    %c0_29 = arith.constant 0 : index
    %c0_30 = arith.constant 0 : index
    %58 = vector.load %arg10[%c0_29, %c0_30] : memref<1x128xf32, #tpu.memory_space<vmem>>, vector<1x128xf32>
    %59 = vector.broadcast %58 : vector<1x128xf32> to vector<8x128xf32>
    %60 = arith.addf %57, %59 : vector<8x128xf32>
    %61 = tpu.iota {dimensions = array<i32: 1>} : vector<1x128xi32>
    %c6_i32 = arith.constant 6 : i32
    %62 = vector.broadcast %c6_i32 : i32 to vector<1x128xi32>
    %63 = arith.cmpi sge, %61, %62 : vector<1x128xi32>
    %c12_i32 = arith.constant 12 : i32
    %64 = vector.broadcast %c12_i32 : i32 to vector<1x128xi32>
    %65 = arith.cmpi slt, %61, %64 : vector<1x128xi32>
    %66 = arith.andi %63, %65 : vector<1x128xi1>
    %67 = math.tanh %60 : vector<8x128xf32>
    %cst_31 = arith.constant 1.000000e+00 : f32
    %68 = vector.broadcast %cst_31 : f32 to vector<8x128xf32>
    %69 = arith.addf %67, %68 : vector<8x128xf32>
    %cst_32 = arith.constant 6.000000e+00 : f32
    %70 = vector.broadcast %cst_32 : f32 to vector<8x128xf32>
    %71 = arith.mulf %70, %69 : vector<8x128xf32>
    %cst_33 = arith.constant -1.000000e+01 : f32
    %72 = vector.broadcast %cst_33 : f32 to vector<8x128xf32>
    %73 = arith.addf %72, %71 : vector<8x128xf32>
    %74 = math.exp %73 : vector<8x128xf32>
    %75 = vector.shape_cast %66 : vector<1x128xi1> to vector<1x128xi1>
    %76 = vector.broadcast %75 : vector<1x128xi1> to vector<8x128xi1>
    %77 = arith.select %76, %74, %60 : vector<8x128xi1>, vector<8x128xf32>
    %c0_34 = arith.constant 0 : index
    %c0_35 = arith.constant 0 : index
    %78 = vector.load %arg11[%c0_34, %c0_35] : memref<8x128xf32, #tpu.memory_space<vmem>>, vector<8x128xf32>
    tpu.vector_store %arg11[%c0_34, %c0_35], %77 {strides = array<i32>} : memref<8x128xf32, #tpu.memory_space<vmem>>, vector<8x128xf32>,
    return
  }
}

</mosaic_0001>

<bundles_post_ra>
// kernel: tpu_custom_call.1
= control target key start
LH: loop header
LB: loop body
LE: loop exit
PB: predicated region body
PF: predicated region fallthrough
CT: control target
= control target key end

     0   :  { %16 = vsyncpa [#allocation3], 0  ;;  %s1119_s0 = inlined_call_operand.hbm [shape: f32[8,128], index: 0, kind: input, shape index: {}]   ;;  %s1120_s1 = inlined_call_operand.hbm [shape: bf16[128,128], index: 1, kind: input, shape index: {}]   ;;  %s1121_s2 = inlined_call_operand.vmem [shape: f32[1,128], index: 2, kind: input, shape index: {}]   ;;  %s1122_s3 = inlined_call_operand.vmem [shape: f32[1,128], index: 3, kind: input, shape index: {}]   ;;  %s1123_s4 = inlined_call_operand.vmem [shape: f32[1,128], index: 4, kind: input, shape index: {}]   ;;  %s1124_s5 = inlined_call_operand.hbm [shape: bf16[128,128], index: 5, kind: input, shape index: {}]   ;;  %s1125_s6 = inlined_call_operand.vmem [shape: f32[1,128], index: 6, kind: input, shape index: {}]   ;;  %s1126_s7 = inlined_call_operand.hbm [shape: bf16[128,128], index: 7, kind: input, shape index: {}]   ;;  %s1127_s8 = inlined_call_operand.vmem [shape: f32[1,128], index: 8, kind: input, shape index: {}]   ;;  %s1128_s9 = inlined_call_operand.hbm [shape: bf16[128,128], index: 9, kind: input, shape index: {}]   ;;  %s1129_s10 = inlined_call_operand.vmem [shape: f32[1,128], index: 10, kind: input, shape index: {}]   ;;  %s1130_s11 = inlined_call_operand.hbm [shape: f32[8,128], index: 11, kind: output, shape index: {}]  }
   0x1   :  { %17 = vsyncpa [#allocation6], 0 }
   0x2   :  { %18 = vsyncpa [#allocation9], 0 }
   0x3   :  { %19 = vsyncpa [#allocation4], 0  ;;  %s955_s17 = smov [#allocation5]  }
   0x4   :  { %s35_s18 = sshll.u32 %s955_s17, 4  ;;  %s36_s18 = int_to_ptr.vmem [resolvable:$true] %s35_s18 }
   0x5   :  { %s835_s19 = scalar_lea.vmem %s36_s18, 1024  ;;  %p840_p1 = scmp.lt.s32.totalorder %s36_s18, %s36_s18 }
   0x6   :  { %p836_p0 = scmp.ne.s32.totalorder %s36_s18, %s835_s19  ;;  %p841_p2 = scmp.lt.s32.totalorder %s835_s19, %s835_s19 }
   0x8   :  { %p842_p3 = por %p841_p2, %p840_p1 }
   0xa   :  { %p843_p4 = pnand %p842_p3, %p836_p0 }
   0xc   :  { %846 = shalt.err (!%p843_p4)
}
   0xd   :  { %s956_s20 = smov 64   ;;  %s957_s21 = smov 4  }
   0xe   :  { %41 = dma.hbm_to_vmem [thread:$0]  %s1120_s1, 1024, %s36_s18, [#allocation6], %s956_s20, %s956_s20, %s957_s21  }
   0xf   :  { %s958_s24 = smov [#allocation8]   ;;  %s959_s26 = smov [#allocation2]  }
  0x10   :  { %s67_s25 = sshll.u32 %s958_s24, 4  ;;  %s26_s27 = sshll.u32 %s959_s26, 4  ;;  %s68_s25 = int_to_ptr.vmem [resolvable:$true] %s67_s25  ;;  %s27_s27 = int_to_ptr.vmem [resolvable:$true] %s26_s27 }
  0x11   :  { %s855_s28 = scalar_lea.vmem %s68_s25, 1024  ;;  %p860_p6 = scmp.lt.s32.totalorder %s68_s25, %s68_s25 }
  0x12   :  { %p856_p5 = scmp.ne.s32.totalorder %s68_s25, %s855_s28  ;;  %p861_p7 = scmp.lt.s32.totalorder %s855_s28, %s855_s28 }
  0x14   :  { %p862_p8 = por %p861_p7, %p860_p6 }
  0x16   :  { %p863_p9 = pnand %p862_p8, %p856_p5 }
  0x18   :  { %866 = shalt.err (!%p863_p9)
}
  0x19   :  { %73 = dma.hbm_to_vmem [thread:$0]  %s1126_s7, 1024, %s68_s25, [#allocation9], %s956_s20, %s956_s20, %s957_s21  }
  0x1a   :  { %s875_s1 = scalar_lea.vmem %s27_s27, 128  ;;  %p880_p11 = scmp.lt.s32.totalorder %s27_s27, %s27_s27 }
  0x1b   :  { %p876_p10 = scmp.ne.s32.totalorder %s27_s27, %s875_s1  ;;  %p881_p12 = scmp.lt.s32.totalorder %s875_s1, %s875_s1 }
  0x1d   :  { %p882_p13 = por %p881_p12, %p880_p11 }
  0x1f   :  { %p883_p0 = pnand %p882_p13, %p876_p10 }
  0x21   :  { %886 = shalt.err (!%p883_p0)
}
  0x22   :  { %29 = dma.hbm_to_vmem [thread:$0]  %s1119_s0, 128, %s27_s27, [#allocation3]  }
  0x23   :  { %s960_s14 = smov [#allocation7]   ;;  %s961_s16 = smov [#allocation10]  }
  0x24   :  { %s53_s15 = sshll.u32 %s960_s14, 4  ;;  %s81_s17 = sshll.u32 %s961_s16, 4  ;;  %s54_s15 = int_to_ptr.vmem [resolvable:$true] %s53_s15  ;;  %s82_s17 = int_to_ptr.vmem [resolvable:$true] %s81_s17 }
  0x25   :  { %s895_s18 = scalar_lea.vmem %s54_s15, 1024  ;;  %p900_p2 = scmp.lt.s32.totalorder %s54_s15, %s54_s15 }
  0x26   :  { %p896_p1 = scmp.ne.s32.totalorder %s54_s15, %s895_s18  ;;  %p901_p3 = scmp.lt.s32.totalorder %s895_s18, %s895_s18 }
  0x28   :  { %p902_p4 = por %p901_p3, %p900_p2 }
  0x2a   :  { %p903_p5 = pnand %p902_p4, %p896_p1 }
  0x2c   :  { %906 = shalt.err (!%p903_p5)
}
  0x2d   :  { %59 = dma.hbm_to_vmem [thread:$0]  %s1124_s5, 1024, %s54_s15, [#allocation6], %s956_s20, %s956_s20, %s957_s21  }
  0x2e   :  { %s915_s0 = scalar_lea.vmem %s82_s17, 1024  ;;  %p920_p7 = scmp.lt.s32.totalorder %s82_s17, %s82_s17 }
  0x2f   :  { %p916_p6 = scmp.ne.s32.totalorder %s82_s17, %s915_s0  ;;  %p921_p8 = scmp.lt.s32.totalorder %s915_s0, %s915_s0 }
  0x31   :  { %p922_p9 = por %p921_p8, %p920_p7 }
  0x33   :  { %p923_p10 = pnand %p922_p9, %p916_p6 }
  0x35   :  { %926 = shalt.err (!%p923_p10)
}
  0x36   :  { %87 = dma.hbm_to_vmem [thread:$0]  %s1128_s9, 1024, %s82_s17, [#allocation9], %s956_s20, %s956_s20, %s957_s21  }
  0x37   :  { %947 = dma.done.wait [#allocation3], 128  }
  0x38   :  { %948 = vsyncadd [#allocation3], 4294967168 }
  0x39   :  { %949 = dma.done.wait [#allocation6], 2048  }
  0x3a   :  { %950 = vsyncadd [#allocation6], 4294965248 }
  0x3b   :  { %951 = dma.done.wait [#allocation9], 2048  }
  0x3c   :  { %952 = vsyncadd [#allocation9], 4294965248  ;;  %v962_v0 = vmov 0.0   ;;  %vm963_vm0 = vmmov 0   ;;  %v787_v1 = vld [vmem:[#allocation5 + $0x38] sm:$0xff]   ;;  %v788_v2 = vld [vmem:[#allocation5 + $0x30] sm:$0xff]   ;;  %v219_v11 = vlaneseq }
  0x3d   :  { %697 = vmatprep.subr.bf16.mxu0 %v962_v0  ;;  %713 = vmatprep.mubr.msk.bf16.mxu0 %vm963_vm0, %v962_v0  ;;  %v789_v3 = vld [vmem:[#allocation5 + $0x28] sm:$0xff]   ;;  %v790_v4 = vld [vmem:[#allocation5 + $0x20] sm:$0xff]   ;;  %v791_v5 = vld [vmem:[#allocation5 + $0x18] sm:$0xff]  }
  0x3e   :  { %717 = vmatprep.subr.bf16.mxu1 %v962_v0  ;;  %733 = vmatprep.mubr.msk.bf16.mxu1 %vm963_vm0, %v962_v0  ;;  %v792_v6 = vld [vmem:[#allocation5 + $0x10] sm:$0xff]   ;;  %v793_v7 = vld [vmem:[#allocation5 + $0x8] sm:$0xff]   ;;  %v794_v8 = vld [vmem:[#allocation5] sm:$0xff]   ;;  %v1068_v12 = vand.u32 127, %v219_v11 }
  0x3f   :  { %698 = vmatpush3.bf16.msra.mxu0 %v787_v1  ;;  %v106_v9 = vld [vmem:[#allocation2] sm:$0xff]  ;;  %v796_v27 = vld [vmem:[#allocation7 + $0x30] sm:$0xff]   ;;  %v797_v28 = vld [vmem:[#allocation7 + $0x28] sm:$0xff]  }
  0x40   :  { %699 = vmatprep.subr.bf16.mxu0 %v962_v0  ;;  %v107_v10 = vpack.c.bf16 %v106_v9, %v106_v9  ;;  %vm221_vm1 = vcmp.lt.s32.totalorder %v1068_v12, 50  ;;  %v622_v13 = vld [vmem:[%s1121_s2] ss:$0 sm:$0xff]  ;;  %v798_v29 = vld [vmem:[#allocation7 + $0x20] sm:$0xff]   ;;  %v800_v31 = vld [vmem:[#allocation7 + $0x10] sm:$0xff]   ;;  %vm592_vm2 = vcmp.ge.s32.totalorder %v1068_v12, 6 }
  0x41   :  { %v631_v15 = vsel %vm221_vm1, 1.0, %v962_v0  ;;  %v795_v26 = vld [vmem:[#allocation7 + $0x38] sm:$0xff]   ;;  %v801_v32 = vld [vmem:[#allocation7 + $0x8] sm:$0xff]   ;;  %v802_v33 = vld [vmem:[#allocation7] sm:$0xff]   ;;  %vm593_vm3 = vcmp.lt.s32.totalorder %v1068_v12, 12 }
  0x42   :  { %718 = vmatpush3.bf16.msra.mxu1 %v795_v26  ;;  %v799_v30 = vld [vmem:[#allocation7 + $0x18] sm:$0xff]   ;;  %v804_v35 = vld [vmem:[#allocation8 + $0x30] sm:$0xff]   ;;  %v805_v36 = vld [vmem:[#allocation8 + $0x28] sm:$0xff]  }
  0x43   :  { %700 = vmatpush3.bf16.msra.mxu0 %v788_v2  ;;  %719 = vmatprep.subr.bf16.mxu1 %v962_v0  ;;  %v803_v34 = vld [vmem:[#allocation8 + $0x38] sm:$0xff]   ;;  %v806_v37 = vld [vmem:[#allocation8 + $0x20] sm:$0xff]   ;;  %v808_v39 = vld [vmem:[#allocation8 + $0x10] sm:$0xff]  }
  0x44   :  { %701 = vmatprep.subr.bf16.mxu0 %v962_v0  ;;  %v807_v38 = vld [vmem:[#allocation8 + $0x18] sm:$0xff]   ;;  %v809_v51 = vld [vmem:[#allocation8 + $0x8] sm:$0xff]   ;;  %v810_v52 = vld [vmem:[#allocation8] sm:$0xff]  }
  0x45   :  { %v632_v44 = vld [vmem:[%s1122_s3] ss:$0 sm:$0xff]  ;;  %v812_v54 = vld [vmem:[#allocation10 + $0x30] sm:$0xff]   ;;  %v813_v55 = vld [vmem:[#allocation10 + $0x28] sm:$0xff]  }
  0x46   :  { %720 = vmatpush3.bf16.msra.mxu1 %v796_v27  ;;  %v633_v46 = vld [vmem:[%s1123_s4] ss:$0 sm:$0xff]  ;;  %v814_v56 = vld [vmem:[#allocation10 + $0x20] sm:$0xff]   ;;  %v816_v58 = vld [vmem:[#allocation10 + $0x10] sm:$0xff]  }
  0x47   :  { %702 = vmatpush3.bf16.msra.mxu0 %v789_v3  ;;  %721 = vmatprep.subr.bf16.mxu1 %v962_v0  ;;  %v811_v53 = vld [vmem:[#allocation10 + $0x38] sm:$0xff]   ;;  %vm594_vm4 = vmand %vm592_vm2, %vm593_vm3 }
  0x48   :  { %703 = vmatprep.subr.bf16.mxu0 %v962_v0  ;;  %v815_v57 = vld [vmem:[#allocation10 + $0x18] sm:$0xff]  }
  0x49   :  { %v634_v59 = vld [vmem:[%s1125_s6] ss:$0 sm:$0xff] }
  0x4a   :  { %722 = vmatpush3.bf16.msra.mxu1 %v797_v28 }
  0x4b   :  { %704 = vmatpush3.bf16.msra.mxu0 %v790_v4  ;;  %723 = vmatprep.subr.bf16.mxu1 %v962_v0  ;;  %v817_v4 = vld [vmem:[#allocation10 + $0x8] sm:$0xff]  }
  0x4c   :  { %705 = vmatprep.subr.bf16.mxu0 %v962_v0 }
  0x4e   :  { %724 = vmatpush3.bf16.msra.mxu1 %v798_v29 }
  0x4f   :  { %706 = vmatpush3.bf16.msra.mxu0 %v791_v5  ;;  %725 = vmatprep.subr.bf16.mxu1 %v962_v0  ;;  %v818_v5 = vld [vmem:[#allocation10] sm:$0xff]  }
  0x50   :  { %707 = vmatprep.subr.bf16.mxu0 %v962_v0 }
  0x52   :  { %726 = vmatpush3.bf16.msra.mxu1 %v799_v30 }
  0x53   :  { %708 = vmatpush3.bf16.msra.mxu0 %v792_v6  ;;  %727 = vmatprep.subr.bf16.mxu1 %v962_v0  ;;  %v643_v6 = vld [vmem:[%s1127_s8] ss:$0 sm:$0xff]  ;;  %s964_s8 = smov [#allocation11]  }
  0x54   :  { %709 = vmatprep.subr.bf16.mxu0 %v962_v0  ;;  %s611_s28 = sshll.u32 %s964_s8, 4  ;;  %s612_s28 = int_to_ptr.vmem [resolvable:$true] %s611_s28 }
  0x55   :  { %p932_p12 = scmp.lt.s32.totalorder %s612_s28, %s612_s28 }
  0x56   :  { %728 = vmatpush3.bf16.msra.mxu1 %v800_v31 }
  0x57   :  { %710 = vmatpush3.bf16.msra.mxu0 %v793_v7  ;;  %729 = vmatprep.subr.bf16.mxu1 %v962_v0 }
  0x58   :  { %711 = vmatprep.subr.bf16.mxu0 %v962_v0 }
  0x5a   :  { %730 = vmatpush3.bf16.msra.mxu1 %v801_v32 }
  0x5b   :  { %712 = vmatpush3.bf16.msra.mxu0 %v794_v8  ;;  %731 = vmatprep.subr.bf16.mxu1 %v962_v0 }
  0x5c   :  { %737 = vmatprep.subr.bf16.mxu0 %v962_v0 }
  0x5e   :  { %714 = vmatmul.mubr.bf16.vlgmr.msra.gmra.mxu0 %v107_v10  ;;  %732 = vmatpush3.bf16.msra.mxu1 %v802_v33 }
  0x5f   :  { %753 = vmatprep.mubr.msk.bf16.mxu0 %vm963_vm0, %v962_v0  ;;  %757 = vmatprep.subr.bf16.mxu1 %v962_v0 }
  0x60   :  { %738 = vmatpush3.bf16.msra.mxu0 %v803_v34 }
  0x61   :  { %739 = vmatprep.subr.bf16.mxu0 %v962_v0 }
  0x64   :  { %740 = vmatpush3.bf16.msra.mxu0 %v804_v35 }
  0x65   :  { %741 = vmatprep.subr.bf16.mxu0 %v962_v0 }
  0x68   :  { %742 = vmatpush3.bf16.msra.mxu0 %v805_v36 }
  0x69   :  { %743 = vmatprep.subr.bf16.mxu0 %v962_v0 }
  0x6c   :  { %744 = vmatpush3.bf16.msra.mxu0 %v806_v37 }
  0x6d   :  { %745 = vmatprep.subr.bf16.mxu0 %v962_v0 }
  0x70   :  { %746 = vmatpush3.bf16.msra.mxu0 %v807_v38 }
  0x71   :  { %747 = vmatprep.subr.bf16.mxu0 %v962_v0 }
  0x74   :  { %748 = vmatpush3.bf16.msra.mxu0 %v808_v39 }
  0x75   :  { %749 = vmatprep.subr.bf16.mxu0 %v962_v0 }
  0x78   :  { %750 = vmatpush3.bf16.msra.mxu0 %v809_v51 }
  0x79   :  { %751 = vmatprep.subr.bf16.mxu0 %v962_v0 }
  0x7c   :  { %752 = vmatpush3.bf16.msra.mxu0 %v810_v52 }
 0x11e   :  { %v213_v14 = vpop.f32.mrf.mxu0 }
 0x11f   :  { %v214_v16 = vadd.f32 %v622_v13, %v213_v14 }
 0x120   :  { %v715_v17 = vpop.f32.mrf.mxu0 }
 0x121   :  { %v224_v18 = vmul.f32 %v631_v15, %v214_v16 }
 0x122   :  { %v216_v19 = vpop.f32.mrf.mxu0 }
 0x123   :  { %225 = vadd.xlane.f32.xlu0 %v224_v18 }
 0x124   :  { %v716_v20 = vpop.f32.mrf.mxu0 }
 0x1ac   :  { %v226_v21 = vpop.xlane.xlu0 %225 }
 0x1ad   :  { %v227_v22 = vmul.f32 0.02, %v226_v21 }
 0x1af   :  { %v228_v23 = vsub.f32 %v214_v16, %v227_v22 }
 0x1b1   :  { %v229_v24 = vmul.f32 %v631_v15, %v228_v23  ;;  %v652_v15 = vld [vmem:[%s1129_s10] ss:$0 sm:$0xff]  ;;  %s927_s10 = scalar_lea.vmem %s612_s28, 128 }
 0x1b2   :  { %p928_p11 = scmp.ne.s32.totalorder %s612_s28, %s927_s10  ;;  %p933_p13 = scmp.lt.s32.totalorder %s927_s10, %s927_s10 }
 0x1b3   :  { %v230_v25 = vmul.f32 %v229_v24, %v229_v24 }
 0x1b4   :  { %p934_p0 = por %p933_p13, %p932_p12 }
 0x1b5   :  { %231 = vadd.xlane.f32.xlu0 %v230_v25 }
 0x1b6   :  { %p935_p1 = pnand %p934_p0, %p928_p11 }
 0x23e   :  { %v232_v40 = vpop.xlane.xlu0 %231 }
 0x23f   :  { %v233_v41 = vmul.f32 0.02, %v232_v40 }
 0x241   :  { %v234_v42 = vadd.f32 1e-05, %v233_v41 }
 0x243   :  { %819 = vrsqrt.f32 %v234_v42 }
 0x250   :  { %v820_v43 = vpop.eup %819 }
 0x251   :  { %v236_v45 = vmul.f32 %v820_v43, %v229_v24 }
 0x253   :  { %v244_v47 = vmul.f32 %v632_v44, %v236_v45 }
 0x255   :  { %v252_v48 = vadd.f32 %v633_v46, %v244_v47 }
 0x257   :  { %821 = vtanh.f32 %v252_v48 }
 0x264   :  { %v822_v49 = vpop.eup %821 }
 0x265   :  { %v254_v50 = vpack.c.bf16 %v822_v49, %v822_v49 }
 0x267   :  { %734 = vmatmul.mubr.bf16.vlgmr.msra.gmra.mxu1 %v254_v50 }
 0x268   :  { %773 = vmatprep.mubr.msk.bf16.mxu1 %vm963_vm0, %v962_v0  ;;  %758 = vmatpush3.bf16.msra.mxu1 %v811_v53 }
 0x269   :  { %759 = vmatprep.subr.bf16.mxu1 %v962_v0 }
 0x26c   :  { %760 = vmatpush3.bf16.msra.mxu1 %v812_v54 }
 0x26d   :  { %761 = vmatprep.subr.bf16.mxu1 %v962_v0 }
 0x270   :  { %762 = vmatpush3.bf16.msra.mxu1 %v813_v55 }
 0x271   :  { %763 = vmatprep.subr.bf16.mxu1 %v962_v0 }
 0x274   :  { %764 = vmatpush3.bf16.msra.mxu1 %v814_v56 }
 0x275   :  { %765 = vmatprep.subr.bf16.mxu1 %v962_v0 }
 0x278   :  { %766 = vmatpush3.bf16.msra.mxu1 %v815_v57 }
 0x279   :  { %767 = vmatprep.subr.bf16.mxu1 %v962_v0 }
 0x27c   :  { %768 = vmatpush3.bf16.msra.mxu1 %v816_v58 }
 0x27d   :  { %769 = vmatprep.subr.bf16.mxu1 %v962_v0 }
 0x280   :  { %770 = vmatpush3.bf16.msra.mxu1 %v817_v4 }
 0x281   :  { %771 = vmatprep.subr.bf16.mxu1 %v962_v0 }
 0x284   :  { %772 = vmatpush3.bf16.msra.mxu1 %v818_v5 }
 0x327   :  { %v360_v60 = vpop.f32.mrf.mxu1 }
 0x328   :  { %v361_v61 = vadd.f32 %v634_v59, %v360_v60 }
 0x329   :  { %v735_v62 = vpop.f32.mrf.mxu1 }
 0x32a   :  { %v366_v63 = vmax.f32 %v361_v61, 0.0 }
 0x32b   :  { %v363_v1 = vpop.f32.mrf.mxu1 }
 0x32c   :  { %v367_v2 = vpack.c.bf16 %v366_v63, %v366_v63 }
 0x32d   :  { %v736_v3 = vpop.f32.mrf.mxu1 }
 0x32e   :  { %754 = vmatmul.mubr.bf16.vlgmr.msra.gmra.mxu0 %v367_v2 }
 0x3ee   :  { %v473_v7 = vpop.f32.mrf.mxu0 }
 0x3ef   :  { %v474_v8 = vadd.f32 %v643_v6, %v473_v7 }
 0x3f0   :  { %v755_v9 = vpop.f32.mrf.mxu0 }
 0x3f1   :  { %v479_v10 = vmax.f32 %v474_v8, 0.0 }
 0x3f2   :  { %v476_v11 = vpop.f32.mrf.mxu0 }
 0x3f3   :  { %v480_v13 = vpack.c.bf16 %v479_v10, %v479_v10 }
 0x3f4   :  { %v756_v14 = vpop.f32.mrf.mxu0 }
 0x3f5   :  { %774 = vmatmul.mubr.bf16.vlgmr.msra.gmra.mxu1 %v480_v13 }
 0x4b5   :  { %v586_v16 = vpop.f32.mrf.mxu1 }
 0x4b6   :  { %v587_v0 = vadd.f32 %v652_v15, %v586_v16 }
 0x4b7   :  { %v775_v17 = vpop.f32.mrf.mxu1 }
 0x4b8   :  { %823 = vtanh.f32 %v587_v0 }
 0x4b9   :  { %v589_v18 = vpop.f32.mrf.mxu1 }
 0x4bb   :  { %v776_v19 = vpop.f32.mrf.mxu1 }
 0x4c5   :  { %v824_v20 = vpop.eup %823 }
 0x4c6   :  { %v596_v21 = vadd.f32 1.0, %v824_v20 }
 0x4c8   :  { %v597_v22 = vmul.f32 6.0, %v596_v21 }
 0x4ca   :  { %v598_v23 = vadd.f32 -10.0, %v597_v22 }
 0x4cc   :  { %v599_v24 = vmul.f32 1.442695, %v598_v23 }
 0x4ce   :  { %825 = vpow2.f32 %v599_v24 }
 0x4db   :  { %v826_v25 = vpop.eup %825 }
 0x4dc   :  { %v603_v26 = vsel %vm594_vm4, %v826_v25, %v587_v0 }
 0x4dd   :  { %604 = vst [vmem:[#allocation11] sm:$0xff] %v603_v26 }
 0x4de   :  { %938 = shalt.err (!%p935_p1)
}
 0x4df   :  { %614 = dma.vmem_to_hbm [thread:$0]  %s612_s28, 128, %s1130_s11, [#allocation4]  }
 0x4e0   :  { %953 = dma.done.wait [#allocation4], 128  }
 0x4e1   :  { %954 = vsyncadd [#allocation4], 4294967168 }
 0x4e2   :  { %618 = vsyncpa [#allocation3], 1 }
 0x4e3   :  { %619 = vsyncpa [#allocation6], 1 }
 0x4e4   :  { %620 = vsyncpa [#allocation9], 1 }
 0x4e5   :  { %621 = vsyncpa [#allocation4], 1 }

</bundles_post_ra>
